<compile_context>
chip_gen: v5e
topology: v5e:2x2
jax: 0.10.0
libtpu: 0.0.40
codegen_flags: <defaults>
</compile_context>

<pallas_src>
import jax
import jax.numpy as jnp
from jax.experimental import pallas as pl
from jax.experimental.pallas import tpu as pltpu


# ---------------------------------------------------------------------------
# Host-side packing helper: stack 2D arrays row-wise into one f32 slab.
# Row starts are aligned to 8 (sublane) so every kernel slice is tile-aligned.
# ---------------------------------------------------------------------------

def _pack_rows(arrays, width, row_align=8):
    offsets, chunks, rows = [], [], 0
    for a in arrays:
        a = jnp.asarray(a, jnp.float32)
        r, c = a.shape
        offsets.append((rows, r, c))
        r_pad = (-r) % row_align
        chunks.append(jnp.pad(a, ((0, r_pad), (0, width - c))))
        rows += r + r_pad
    return jnp.concatenate(chunks, axis=0), offsets


# ---------------------------------------------------------------------------
# Fused Pallas kernel (single step; everything resident in VMEM/vregs)
# ---------------------------------------------------------------------------

def make_fused_kernel(cfg):
    L, S, B = cfg["L"], cfg["S"], cfg["B"]
    O1 = cfg["O1"]
    g_off, p_off = cfg["g_off"], cfg["p_off"]

    def _slab(ref, off):
        r0, r, c = off
        return ref[r0:r0 + r, 0:c]          # static slice -> zero-cost view + one load

    def kernel(g_ref, p_ref, o_ref):
        # ---- graph-side loads, hoisted once (reused across the unrolled layer loop)
        a = _slab(g_ref, g_off["a"])         # (N, N) normalized adjacency
        ms = _slab(g_ref, g_off["ms"])       # (S*B, N)  row s*B+b = P[b] @ D_s
        h = _slab(g_ref, g_off["x"])         # (N, F) node features

        acc = jnp.zeros((B, O1), jnp.float32)   # fc1 pre-activation accumulator

        for l in range(L):                       # static unroll (L small)
            w = _slab(p_ref, p_off[f"conv_w{l}"])          # (F or H, H)
            b = _slab(p_ref, p_off[f"conv_b{l}"])          # (1, H)
            h = jnp.maximum(
                jnp.dot(jnp.dot(a, h, preferred_element_type=jnp.float32), w,
                        preferred_element_type=jnp.float32) + b, 0.0)

            # multi-scale sum-pooling for ALL scales in one MXU push
            pooled = jnp.dot(ms, h, preferred_element_type=jnp.float32)      # (S*B, H)

            # fc1 partial for ALL scales in one MXU push:
            #   part[s*B+b, s'*O1+o] = sum_h pooled_s[b, h] * W1[l, s', h, o]
            # only the scale-matched (s == s') diagonal blocks belong to the concat
            # contraction; sum them on the VPU (static slices + adds).
            w1l = _slab(p_ref, p_off[f"w1cat{l}"])                            # (H, S*O1)
            part = jnp.dot(pooled, w1l, preferred_element_type=jnp.float32)   # (S*B, S*O1)
            for s in range(S):
                acc = acc + part[s * B:(s + 1) * B, s * O1:(s + 1) * O1]

        # ---- fc head: fc1 -> relu -> (dropout=id) -> fc2 -> relu -> fc3 -> log_softmax
        b1 = _slab(p_ref, p_off["b1"])
        w2 = _slab(p_ref, p_off["w2"])
        b2 = _slab(p_ref, p_off["b2"])
        w3 = _slab(p_ref, p_off["w3"])
        b3 = _slab(p_ref, p_off["b3"])

        h1 = jnp.maximum(acc + b1, 0.0)
        h2 = jnp.maximum(jnp.dot(h1, w2, preferred_element_type=jnp.float32) + b2, 0.0)
        logits = jnp.dot(h2, w3, preferred_element_type=jnp.float32) + b3
        mx = jnp.max(logits, axis=-1, keepdims=True)
        z = logits - mx
        lse = jnp.log(jnp.sum(jnp.exp(z), axis=-1, keepdims=True))
        o_ref[...] = z - lse

    return kernel


# ---------------------------------------------------------------------------
# Wrapper: pack operands into 2 slabs, one pallas_call for the whole forward
# ---------------------------------------------------------------------------

def model_hierarchical_forward(x, a_norm, ms_flat, params, num_layers, scale, hidden):
    N, F_DIM = x.shape
    SB = ms_flat.shape[0]
    B = SB // scale
    O1 = params["w1"].shape[1]
    O2 = params["w2"].shape[1]
    C = params["w3"].shape[1]

    # ---- graph slab: a_norm / ms_flat / x, row-stacked, width N --------------------
    g_slab, g_offs = _pack_rows([a_norm, ms_flat, x], width=N)
    g_off = {"a": g_offs[0], "ms": g_offs[1], "x": g_offs[2]}

    # ---- fc1 weight reorganized per layer to (H, S*O1) ------------------------------
    # reference w1 row index = l*S*H + s*H + h  (layer-major, scale-major within layer)
    #   w1cat[l][h, s*O1 + o] = w1[l*S*H + s*H + h, o]
    w1cat = params["w1"].reshape(num_layers, scale, hidden, O1)
    w1cat = jnp.transpose(w1cat, (0, 2, 1, 3)).reshape(num_layers, hidden, scale * O1)

    # ---- parameter slab --------------------------------------------------------------
    p_arrays, p_names = [], []
    for l in range(num_layers):
        p_arrays.append(params["conv_w"][l]); p_names.append(f"conv_w{l}")
    for l in range(num_layers):
        p_arrays.append(params["conv_b"][l]); p_names.append(f"conv_b{l}")
    for l in range(num_layers):
        p_arrays.append(w1cat[l]); p_names.append(f"w1cat{l}")
    for nm in ("b1", "w2", "b2", "w3", "b3"):
        p_arrays.append(params[nm]); p_names.append(nm)
    p_width = max(int(a.shape[1]) for a in p_arrays)
    p_slab, p_offs = _pack_rows(p_arrays, width=p_width)
    p_off = dict(zip(p_names, p_offs))

    cfg = dict(L=num_layers, S=scale, B=B, O1=O1, g_off=g_off, p_off=p_off)

    # ---- advisory cost hint (kernel is launch-latency bound; keep schedule tight) ---
    flops = 0
    for l in range(num_layers):
        h_in = F_DIM if l == 0 else hidden
        flops += 2 * (N * N * h_in + N * h_in * hidden)            # GCN layer
        flops += 2 * (scale * B * N * hidden)                      # pooling matmul
        flops += 2 * (scale * B * hidden * scale * O1)             # fc1 block matmul
    flops += 2 * B * O1 * O2 + 2 * B * O2 * C                      # fc2, fc3
    bytes_accessed = int(g_slab.size + p_slab.size + B * C) * 4
    cost = pl.CostEstimate(flops=int(flops),
                           transcendentals=int(B * (C + 1)),
                           bytes_accessed=bytes_accessed)

    vmem_spec = pl.BlockSpec(memory_space=pltpu.MemorySpace.VMEM)
    return pl.pallas_call(
        make_fused_kernel(cfg),
        out_shape=jax.ShapeDtypeStruct((B, C), jnp.float32),
        in_specs=[vmem_spec, vmem_spec],      # whole-array VMEM, no pipelining/double buffer
        out_specs=vmem_spec,
        cost_estimate=cost,
    )(g_slab, p_slab)


# ---------------------------------------------------------------------------
# Pure-JAX reference (mirrors the PyTorch module, eval / non-mixup branch)
# ---------------------------------------------------------------------------

def reference_forward(x, a_norm, pool_mat, d_ops, params, num_layers, scale):
    h = x
    feats = []
    for l in range(num_layers):
        h = jnp.maximum(a_norm @ h @ params["conv_w"][l] + params["conv_b"][l], 0.0)
        pooled = [pool_mat @ (d_ops[s] @ h) for s in range(scale)]
        feats.append(jnp.concatenate(pooled, axis=-1))
    f = jnp.concatenate(feats, axis=-1)
    h1 = jnp.maximum(f @ params["w1"] + params["b1"], 0.0)
    h2 = jnp.maximum(h1 @ params["w2"] + params["b2"], 0.0)
    logits = h2 @ params["w3"] + params["b3"]
    return jax.nn.log_softmax(logits, axis=-1)


# ---------------------------------------------------------------------------
# Main
# ---------------------------------------------------------------------------

if __name__ == "__main__":
    key = jax.random.PRNGKey(0)

    # hyperparameters (small, consistent with the module's __init__)
    NODES_PER_GRAPH = 8
    B = 2                       # number of graphs in the batch
    N = B * NODES_PER_GRAPH     # total nodes = 16
    F_DIM = 8                   # args.num_features
    H = 32                      # args.hidden_dim
    L = 3                       # args.num_layers
    C = 4                       # args.num_classes
    r, Lev = 2, 2
    S = (r - 1) * Lev + 1       # args-derived scale = 3

    # ---- graph construction (ring per graph) ----
    src, dst = [], []
    for g in range(B):
        for i in range(NODES_PER_GRAPH):
            u = g * NODES_PER_GRAPH + i
            v = g * NODES_PER_GRAPH + (i + 1) % NODES_PER_GRAPH
            src += [u, v]
            dst += [v, u]
    edge_index = jnp.array([src, dst], dtype=jnp.int32)

    adj = jnp.zeros((N, N), jnp.float32).at[edge_index[0], edge_index[1]].set(1.0)
    adj = adj + jnp.eye(N, dtype=jnp.float32)                 # self-loops
    deg = adj.sum(axis=1)
    d_inv_sqrt = jnp.where(deg > 0, 1.0 / jnp.sqrt(deg), 0.0)  # guard isolated nodes
    a_norm = d_inv_sqrt[:, None] * adj * d_inv_sqrt[None, :]   # GCN normalization

    # batch assignment + sum-pooling matrix
    batch = jnp.repeat(jnp.arange(B, dtype=jnp.int32), NODES_PER_GRAPH)
    P = jax.nn.one_hot(batch, B, dtype=jnp.float32).T          # (B, N)

    # multi-scale operators collapsed with pooling, flattened scale-major:
    #   ms_flat[s*B + b, :] = P[b] @ D_s   with  D_0 = I, D_1 = A_norm, D_2 = A_norm^2
    d_ops = [jnp.eye(N, dtype=jnp.float32), a_norm, a_norm @ a_norm][:S]
    ms_flat = jnp.concatenate([P @ d_ops[s] for s in range(S)], axis=0)   # (S*B, N)

    # ---- deterministic parameters ----
    keys = jax.random.split(key, 16)

    def init(k, shape, fan_in):
        return jax.random.normal(k, shape, jnp.float32) / jnp.sqrt(float(fan_in))

    params = {
        "conv_w": [init(keys[0], (F_DIM, H), F_DIM),
                   init(keys[1], (H, H), H),
                   init(keys[2], (H, H), H)],
        "conv_b": [jnp.zeros((1, H), jnp.float32) for _ in range(L)],
        "w1": init(keys[3], (S * H * L, H), S * H * L),
        "b1": init(keys[4], (1, H), S * H * L),
        "w2": init(keys[5], (H, H // 2), H),
        "b2": init(keys[6], (1, H // 2), H),
        "w3": init(keys[7], (H // 2, C), H // 2),
        "b3": init(keys[8], (1, C), H // 2),
    }

    # ---- node features ----
    x = jax.random.normal(keys[9], (N, F_DIM), jnp.float32)

    out = model_hierarchical_forward(x, a_norm, ms_flat, params,
                                     num_layers=L, scale=S, hidden=H)
    out = jax.block_until_ready(out)

    assert out.shape == (B, C), out.shape
    # log_softmax rows must exp-sum to ~1
    assert jnp.allclose(jnp.sum(jnp.exp(out), axis=-1), 1.0, atol=1e-4)
    # check against pure-JAX reference of the same forward
    ref = reference_forward(x, a_norm, P, d_ops, params, L, S)
    assert jnp.allclose(out, ref, atol=1e-4, rtol=1e-4), (out, ref)
    print("KERNEL_OK")
</pallas_src>

<mosaic_0001>
module attributes {stable_mosaic.version = 11 : i64} {
  func.func @kernel(%arg0: memref<40x16xf32, #tpu.memory_space<vmem>>, %arg1: memref<264x96xf32, #tpu.memory_space<vmem>>, %arg2: memref<2x4xf32, #tpu.memory_space<vmem>>) attributes {dimension_semantics = [], scalar_prefetch = 0 : i64, scratch_operands = 0 : i64, tpu.core_type = #tpu.core_type<tc>} {
    %c0 = arith.constant 0 : index
    %c0_0 = arith.constant 0 : index
    %0 = vector.load %arg0[%c0, %c0_0] : memref<40x16xf32, #tpu.memory_space<vmem>>, vector<16x16xf32>
    %c16 = arith.constant 16 : index
    %c0_1 = arith.constant 0 : index
    %1 = vector.load %arg0[%c16, %c0_1] : memref<40x16xf32, #tpu.memory_space<vmem>>, vector<6x16xf32>
    %c24 = arith.constant 24 : index
    %c0_2 = arith.constant 0 : index
    %2 = vector.load %arg0[%c24, %c0_2] : memref<40x16xf32, #tpu.memory_space<vmem>>, vector<16x8xf32>
    %cst = arith.constant 0.000000e+00 : f32
    %3 = vector.broadcast %cst : f32 to vector<2x32xf32>
    %c0_3 = arith.constant 0 : index
    %c0_4 = arith.constant 0 : index
    %4 = vector.load %arg1[%c0_3, %c0_4] : memref<264x96xf32, #tpu.memory_space<vmem>>, vector<8x32xf32>
    %c72 = arith.constant 72 : index
    %c0_5 = arith.constant 0 : index
    %5 = vector.load %arg1[%c72, %c0_5] : memref<264x96xf32, #tpu.memory_space<vmem>>, vector<1x32xf32>
    %cst_6 = arith.constant dense<0.000000e+00> : vector<16x8xf32>
    %6 = tpu.matmul %0, %2, %cst_6 {dimension_numbers = #tpu.dot_dimension_numbers<[1], [0], [0], [1], [0, 0, 1, 1], [], []>} : vector<16x16xf32>, vector<16x8xf32>, vector<16x8xf32> -> vector<16x8xf32>
    %cst_7 = arith.constant dense<0.000000e+00> : vector<16x32xf32>
    %7 = tpu.matmul %6, %4, %cst_7 {dimension_numbers = #tpu.dot_dimension_numbers<[1], [0], [0], [1], [0, 0, 1, 1], [], []>} : vector<16x8xf32>, vector<8x32xf32>, vector<16x32xf32> -> vector<16x32xf32>
    %8 = vector.broadcast %5 : vector<1x32xf32> to vector<16x32xf32>
    %9 = arith.addf %7, %8 : vector<16x32xf32>
    %cst_8 = arith.constant 0.000000e+00 : f32
    %10 = vector.broadcast %cst_8 : f32 to vector<16x32xf32>
    %11 = arith.maximumf %9, %10 : vector<16x32xf32>
    %cst_9 = arith.constant dense<0.000000e+00> : vector<6x32xf32>
    %12 = tpu.matmul %1, %11, %cst_9 {dimension_numbers = #tpu.dot_dimension_numbers<[1], [0], [0], [1], [0, 0, 1, 1], [], []>} : vector<6x16xf32>, vector<16x32xf32>, vector<6x32xf32> -> vector<6x32xf32>
    %c96 = arith.constant 96 : index
    %c0_10 = arith.constant 0 : index
    %13 = vector.load %arg1[%c96, %c0_10] : memref<264x96xf32, #tpu.memory_space<vmem>>, vector<32x96xf32>
    %cst_11 = arith.constant dense<0.000000e+00> : vector<6x96xf32>
    %14 = tpu.matmul %12, %13, %cst_11 {dimension_numbers = #tpu.dot_dimension_numbers<[1], [0], [0], [1], [0, 0, 1, 1], [], []>} : vector<6x32xf32>, vector<32x96xf32>, vector<6x96xf32> -> vector<6x96xf32>
    %15 = vector.extract_strided_slice %14 {offsets = [0, 0], sizes = [2, 32], strides = [1, 1]} : vector<6x96xf32> to vector<2x32xf32>
    %16 = arith.addf %3, %15 : vector<2x32xf32>
    %17 = vector.extract_strided_slice %14 {offsets = [2, 32], sizes = [2, 32], strides = [1, 1]} : vector<6x96xf32> to vector<2x32xf32>
    %18 = arith.addf %16, %17 : vector<2x32xf32>
    %19 = vector.extract_strided_slice %14 {offsets = [4, 64], sizes = [2, 32], strides = [1, 1]} : vector<6x96xf32> to vector<2x32xf32>
    %20 = arith.addf %18, %19 : vector<2x32xf32>
    %c8 = arith.constant 8 : index
    %c0_12 = arith.constant 0 : index
    %21 = vector.load %arg1[%c8, %c0_12] : memref<264x96xf32, #tpu.memory_space<vmem>>, vector<32x32xf32>
    %c80 = arith.constant 80 : index
    %c0_13 = arith.constant 0 : index
    %22 = vector.load %arg1[%c80, %c0_13] : memref<264x96xf32, #tpu.memory_space<vmem>>, vector<1x32xf32>
    %cst_14 = arith.constant dense<0.000000e+00> : vector<16x32xf32>
    %23 = tpu.matmul %0, %11, %cst_14 {dimension_numbers = #tpu.dot_dimension_numbers<[1], [0], [0], [1], [0, 0, 1, 1], [], []>} : vector<16x16xf32>, vector<16x32xf32>, vector<16x32xf32> -> vector<16x32xf32>
    %cst_15 = arith.constant dense<0.000000e+00> : vector<16x32xf32>
    %24 = tpu.matmul %23, %21, %cst_15 {dimension_numbers = #tpu.dot_dimension_numbers<[1], [0], [0], [1], [0, 0, 1, 1], [], []>} : vector<16x32xf32>, vector<32x32xf32>, vector<16x32xf32> -> vector<16x32xf32>
    %25 = vector.broadcast %22 : vector<1x32xf32> to vector<16x32xf32>
    %26 = arith.addf %24, %25 : vector<16x32xf32>
    %cst_16 = arith.constant 0.000000e+00 : f32
    %27 = vector.broadcast %cst_16 : f32 to vector<16x32xf32>
    %28 = arith.maximumf %26, %27 : vector<16x32xf32>
    %cst_17 = arith.constant dense<0.000000e+00> : vector<6x32xf32>
    %29 = tpu.matmul %1, %28, %cst_17 {dimension_numbers = #tpu.dot_dimension_numbers<[1], [0], [0], [1], [0, 0, 1, 1], [], []>} : vector<6x16xf32>, vector<16x32xf32>, vector<6x32xf32> -> vector<6x32xf32>
    %c128 = arith.constant 128 : index
    %c0_18 = arith.constant 0 : index
    %30 = vector.load %arg1[%c128, %c0_18] : memref<264x96xf32, #tpu.memory_space<vmem>>, vector<32x96xf32>
    %cst_19 = arith.constant dense<0.000000e+00> : vector<6x96xf32>
    %31 = tpu.matmul %29, %30, %cst_19 {dimension_numbers = #tpu.dot_dimension_numbers<[1], [0], [0], [1], [0, 0, 1, 1], [], []>} : vector<6x32xf32>, vector<32x96xf32>, vector<6x96xf32> -> vector<6x96xf32>
    %32 = vector.extract_strided_slice %31 {offsets = [0, 0], sizes = [2, 32], strides = [1, 1]} : vector<6x96xf32> to vector<2x32xf32>
    %33 = arith.addf %20, %32 : vector<2x32xf32>
    %34 = vector.extract_strided_slice %31 {offsets = [2, 32], sizes = [2, 32], strides = [1, 1]} : vector<6x96xf32> to vector<2x32xf32>
    %35 = arith.addf %33, %34 : vector<2x32xf32>
    %36 = vector.extract_strided_slice %31 {offsets = [4, 64], sizes = [2, 32], strides = [1, 1]} : vector<6x96xf32> to vector<2x32xf32>
    %37 = arith.addf %35, %36 : vector<2x32xf32>
    %c40 = arith.constant 40 : index
    %c0_20 = arith.constant 0 : index
    %38 = vector.load %arg1[%c40, %c0_20] : memref<264x96xf32, #tpu.memory_space<vmem>>, vector<32x32xf32>
    %c88 = arith.constant 88 : index
    %c0_21 = arith.constant 0 : index
    %39 = vector.load %arg1[%c88, %c0_21] : memref<264x96xf32, #tpu.memory_space<vmem>>, vector<1x32xf32>
    %cst_22 = arith.constant dense<0.000000e+00> : vector<16x32xf32>
    %40 = tpu.matmul %0, %28, %cst_22 {dimension_numbers = #tpu.dot_dimension_numbers<[1], [0], [0], [1], [0, 0, 1, 1], [], []>} : vector<16x16xf32>, vector<16x32xf32>, vector<16x32xf32> -> vector<16x32xf32>
    %cst_23 = arith.constant dense<0.000000e+00> : vector<16x32xf32>
    %41 = tpu.matmul %40, %38, %cst_23 {dimension_numbers = #tpu.dot_dimension_numbers<[1], [0], [0], [1], [0, 0, 1, 1], [], []>} : vector<16x32xf32>, vector<32x32xf32>, vector<16x32xf32> -> vector<16x32xf32>
    %42 = vector.broadcast %39 : vector<1x32xf32> to vector<16x32xf32>
    %43 = arith.addf %41, %42 : vector<16x32xf32>
    %cst_24 = arith.constant 0.000000e+00 : f32
    %44 = vector.broadcast %cst_24 : f32 to vector<16x32xf32>
    %45 = arith.maximumf %43, %44 : vector<16x32xf32>
    %cst_25 = arith.constant dense<0.000000e+00> : vector<6x32xf32>
    %46 = tpu.matmul %1, %45, %cst_25 {dimension_numbers = #tpu.dot_dimension_numbers<[1], [0], [0], [1], [0, 0, 1, 1], [], []>} : vector<6x16xf32>, vector<16x32xf32>, vector<6x32xf32> -> vector<6x32xf32>
    %c160 = arith.constant 160 : index
    %c0_26 = arith.constant 0 : index
    %47 = vector.load %arg1[%c160, %c0_26] : memref<264x96xf32, #tpu.memory_space<vmem>>, vector<32x96xf32>
    %cst_27 = arith.constant dense<0.000000e+00> : vector<6x96xf32>
    %48 = tpu.matmul %46, %47, %cst_27 {dimension_numbers = #tpu.dot_dimension_numbers<[1], [0], [0], [1], [0, 0, 1, 1], [], []>} : vector<6x32xf32>, vector<32x96xf32>, vector<6x96xf32> -> vector<6x96xf32>
    %49 = vector.extract_strided_slice %48 {offsets = [0, 0], sizes = [2, 32], strides = [1, 1]} : vector<6x96xf32> to vector<2x32xf32>
    %50 = arith.addf %37, %49 : vector<2x32xf32>
    %51 = vector.extract_strided_slice %48 {offsets = [2, 32], sizes = [2, 32], strides = [1, 1]} : vector<6x96xf32> to vector<2x32xf32>
    %52 = arith.addf %50, %51 : vector<2x32xf32>
    %53 = vector.extract_strided_slice %48 {offsets = [4, 64], sizes = [2, 32], strides = [1, 1]} : vector<6x96xf32> to vector<2x32xf32>
    %54 = arith.addf %52, %53 : vector<2x32xf32>
    %c192 = arith.constant 192 : index
    %c0_28 = arith.constant 0 : index
    %55 = vector.load %arg1[%c192, %c0_28] : memref<264x96xf32, #tpu.memory_space<vmem>>, vector<1x32xf32>
    %c200 = arith.constant 200 : index
    %c0_29 = arith.constant 0 : index
    %56 = vector.load %arg1[%c200, %c0_29] : memref<264x96xf32, #tpu.memory_space<vmem>>, vector<32x16xf32>
    %c232 = arith.constant 232 : index
    %c0_30 = arith.constant 0 : index
    %57 = vector.load %arg1[%c232, %c0_30] : memref<264x96xf32, #tpu.memory_space<vmem>>, vector<1x16xf32>
    %c240 = arith.constant 240 : index
    %c0_31 = arith.constant 0 : index
    %58 = vector.load %arg1[%c240, %c0_31] : memref<264x96xf32, #tpu.memory_space<vmem>>, vector<16x4xf32>
    %c256 = arith.constant 256 : index
    %c0_32 = arith.constant 0 : index
    %59 = vector.load %arg1[%c256, %c0_32] : memref<264x96xf32, #tpu.memory_space<vmem>>, vector<1x4xf32>
    %60 = vector.broadcast %55 : vector<1x32xf32> to vector<2x32xf32>
    %61 = arith.addf %54, %60 : vector<2x32xf32>
    %cst_33 = arith.constant 0.000000e+00 : f32
    %62 = vector.broadcast %cst_33 : f32 to vector<2x32xf32>
    %63 = arith.maximumf %61, %62 : vector<2x32xf32>
    %cst_34 = arith.constant dense<0.000000e+00> : vector<2x16xf32>
    %64 = tpu.matmul %63, %56, %cst_34 {dimension_numbers = #tpu.dot_dimension_numbers<[1], [0], [0], [1], [0, 0, 1, 1], [], []>} : vector<2x32xf32>, vector<32x16xf32>, vector<2x16xf32> -> vector<2x16xf32>
    %65 = vector.broadcast %57 : vector<1x16xf32> to vector<2x16xf32>
    %66 = arith.addf %64, %65 : vector<2x16xf32>
    %cst_35 = arith.constant 0.000000e+00 : f32
    %67 = vector.broadcast %cst_35 : f32 to vector<2x16xf32>
    %68 = arith.maximumf %66, %67 : vector<2x16xf32>
    %cst_36 = arith.constant dense<0.000000e+00> : vector<2x4xf32>
    %69 = tpu.matmul %68, %58, %cst_36 {dimension_numbers = #tpu.dot_dimension_numbers<[1], [0], [0], [1], [0, 0, 1, 1], [], []>} : vector<2x16xf32>, vector<16x4xf32>, vector<2x4xf32> -> vector<2x4xf32>
    %70 = vector.broadcast %59 : vector<1x4xf32> to vector<2x4xf32>
    %71 = arith.addf %69, %70 : vector<2x4xf32>
    %cst_37 = arith.constant dense<0xFF800000> : vector<2xf32>
    %72 = vector.multi_reduction <maximumf>, %71, %cst_37 [1] : vector<2x4xf32> to vector<2xf32>
    %73 = vector.shape_cast %72 : vector<2xf32> to vector<2x1xf32>
    %74 = vector.broadcast %73 : vector<2x1xf32> to vector<2x4xf32>
    %75 = arith.subf %71, %74 : vector<2x4xf32>
    %76 = math.exp %75 : vector<2x4xf32>
    %cst_38 = arith.constant dense<0.000000e+00> : vector<2xf32>
    %77 = vector.multi_reduction <add>, %76, %cst_38 [1] : vector<2x4xf32> to vector<2xf32>
    %78 = vector.shape_cast %77 : vector<2xf32> to vector<2x1xf32>
    %79 = math.log %78 : vector<2x1xf32>
    %80 = vector.broadcast %79 : vector<2x1xf32> to vector<2x4xf32>
    %81 = arith.subf %75, %80 : vector<2x4xf32>
    %c0_39 = arith.constant 0 : index
    %c0_40 = arith.constant 0 : index
    %82 = vector.load %arg2[%c0_39, %c0_40] : memref<2x4xf32, #tpu.memory_space<vmem>>, vector<2x4xf32>
    tpu.vector_store %arg2[%c0_39, %c0_40], %81 {strides = array<i32>} : memref<2x4xf32, #tpu.memory_space<vmem>>, vector<2x4xf32>,
    return
  }
}

</mosaic_0001>

<bundles_post_ra>
// kernel: tpu_custom_call.1
= control target key start
LH: loop header
LB: loop body
LE: loop exit
PB: predicated region body
PF: predicated region fallthrough
CT: control target
= control target key end

     0   :  { %7 = vsyncpa [#allocation3], 0  ;;  %s668_s0 = inlined_call_operand.vmem [shape: f32[40,16], index: 0, kind: input, shape index: {}]   ;;  %s669_s1 = inlined_call_operand.hbm [shape: f32[264,96], index: 1, kind: input, shape index: {}]   ;;  %s670_s2 = inlined_call_operand.hbm [shape: f32[2,4], index: 2, kind: output, shape index: {}]  }
   0x1   :  { %8 = vsyncpa [#allocation4], 0  ;;  %s15_s11 = sshll.u32 %s669_s1, 4  ;;  %s579_s12 = smov [#allocation2]   ;;  %s16_s11 = int_to_ptr.hbm [resolvable:$true] %s15_s11 }
   0x2   :  { %s17_s13 = sshll.u32 %s579_s12, 4  ;;  %s580_s14 = smov 128   ;;  %s18_s13 = int_to_ptr.vmem [resolvable:$true] %s17_s13 }
   0x3   :  { %s581_s15 = smov 8  }
   0x4   :  { %23 = dma.hbm_to_vmem [thread:$0]  %s16_s11, 4224, %s18_s13, [#allocation3], %s580_s14, %s580_s14, %s581_s15  }
   0x5   :  { %575 = dma.done.wait [#allocation3], 4224  }
   0x6   :  { %576 = vsyncadd [#allocation3], 4294963072  ;;  %v32_v0 = vld [vmem:[%s668_s0 + $0x20] sm:$0xff]  ;;  %v31_v1 = vld [vmem:[%s668_s0 + $0x18] sm:$0xff]  ;;  %vm35_vm0 = vcmask 130048   ;;  %vm66_vm1 = vcmask 64512  }
   0x7   :  { %56 = vmatpush.msra.mxu0 %v32_v0  ;;  %v612_v2 = vld [vmem:[%s668_s0] sm:$0xff]  ;;  %v619_v3 = vld [vmem:[%s668_s0 + $0x8] sm:$0xff]  ;;  %v124_v8 = vld [vmem:[#allocation2 + $0x78] sm:$0xff]  ;;  %vm125_vm2 = vcmask 261120   ;;  %s583_s25 = smov 64   ;;  %vm460_vm3 = vcmask 25600  }
   0x8   :  { %v33_v4 = vld [vmem:[#allocation2] sm:$0xff]  ;;  %v123_v9 = vld [vmem:[#allocation2 + $0x70] sm:$0xff]  ;;  %141 = vmatpush.msra.mxu3 %v124_v8  ;;  %v122_v10 = vld [vmem:[#allocation2 + $0x68] sm:$0xff]  ;;  %s584_s26 = smov [#allocation5]   ;;  %s481_s30 = sshll.u32 %s670_s2, 4  ;;  %s482_s30 = int_to_ptr.hbm [resolvable:$true] %s481_s30 }
   0x9   :  { %57 = vmatpush.msra.mxu0 %v31_v1  ;;  %88 = vmatpush.msra.mxu1 %v33_v4  ;;  %v517_v11 = vld [vmem:[#allocation2 + $0x48] ss:$0 sm:$0xff]  ;;  %v626_v17 = vld [vmem:[%s668_s0 + $0x10] sm:$0x3f]  ;;  %v121_v18 = vld [vmem:[#allocation2 + $0x60] sm:$0xff]  ;;  %s582_s0 = smov 96  }
   0xa   :  { %491 = vmatmul.msk.f32.vlgmr.msra.gmra.mxu0 %vm35_vm0, %v612_v2  ;;  %142 = vmatpush.msra.mxu3 %v123_v9  ;;  %v164_v19 = vld [vmem:[#allocation2 + $0x20] sm:$0xff]  ;;  %v163_v20 = vld [vmem:[#allocation2 + $0x18] sm:$0xff]  ;;  %v162_v21 = vld [vmem:[#allocation2 + $0x10] sm:$0xff]  ;;  %s479_s27 = sshll.u32 %s584_s26, 4  ;;  %s480_s27 = int_to_ptr.vmem [resolvable:$true] %s479_s27 }
   0xb   :  { %v161_v22 = vld [vmem:[#allocation2 + $0x8] sm:$0xff]  ;;  %v518_v30 = vld [vmem:[#allocation2 + $0x50] ss:$0 sm:$0xff]  ;;  %v244_v36 = vld [vmem:[#allocation2 + $0x98] sm:$0xff] }
   0xc   :  { %143 = vmatpush.msra.mxu3 %v122_v10  ;;  %v243_v37 = vld [vmem:[#allocation2 + $0x90] sm:$0xff]  ;;  %260 = vmatpush.msrb.mxu0 %v244_v36  ;;  %v242_v38 = vld [vmem:[#allocation2 + $0x88] sm:$0xff]  ;;  %v241_v39 = vld [vmem:[#allocation2 + $0x80] sm:$0xff] }
   0xd   :  { %v283_v40 = vld [vmem:[#allocation2 + $0x40] sm:$0xff]  ;;  %v282_v41 = vld [vmem:[#allocation2 + $0x38] sm:$0xff]  ;;  %v281_v42 = vld [vmem:[#allocation2 + $0x30] sm:$0xff] }
   0xe   :  { %144 = vmatpush.msra.mxu3 %v121_v18  ;;  %261 = vmatpush.msrb.mxu0 %v243_v37  ;;  %v280_v43 = vld [vmem:[#allocation2 + $0x28] sm:$0xff]  ;;  %v519_v51 = vld [vmem:[#allocation2 + $0x58] ss:$0 sm:$0xff]  ;;  %v362_v58 = vld [vmem:[#allocation2 + $0xb0] sm:$0xff] }
   0xf   :  { %v363_v57 = vld [vmem:[#allocation2 + $0xb8] sm:$0xff]  ;;  %v361_v59 = vld [vmem:[#allocation2 + $0xa8] sm:$0xff]  ;;  %v360_v60 = vld [vmem:[#allocation2 + $0xa0] sm:$0xff] }
  0x10   :  { %208 = vmatpush.msrb.mxu3 %v164_v19  ;;  %262 = vmatpush.msrb.mxu0 %v242_v38  ;;  %v403_v1 = vld [vmem:[#allocation2 + $0xe0] sm:$0xff]  ;;  %v400_v4 = vld [vmem:[#allocation2 + $0xc8] sm:$0xff] }
  0x12   :  { %492 = vmatmul.msk.f32.gmra.mxu0 %vm35_vm0, %v619_v3  ;;  %209 = vmatpush.msrb.mxu3 %v163_v20 }
  0x13   :  { %263 = vmatpush.msrb.mxu0 %v241_v39 }
  0x14   :  { %210 = vmatpush.msrb.mxu3 %v162_v21 }
  0x15   :  { %327 = vmatpush.msra.mxu0 %v283_v40 }
  0x16   :  { %211 = vmatpush.msrb.mxu3 %v161_v22  ;;  %v406_v22 = vld [vmem:[#allocation2 + $0xf8] sm:$0xff] }
  0x17   :  { %328 = vmatpush.msra.mxu0 %v282_v41 }
  0x19   :  { %329 = vmatpush.msra.mxu0 %v281_v42 }
  0x1b   :  { %330 = vmatpush.msra.mxu0 %v280_v43 }
  0x87   :  { %v59_v5 = vpop.f32.mrf.mxu0 }
  0x88   :  { %493 = vmatmul.msk.f32.vlgmr.msra.gmra.mxu1 %vm66_vm1, %v59_v5 }
  0x8f   :  { %v62_v6 = vpop.f32.mrf.mxu0 }
  0x90   :  { %494 = vmatmul.msk.f32.gmra.mxu1 %vm66_vm1, %v62_v6 }
 0x105   :  { %v90_v7 = vpop.f32.mrf.mxu1 }
 0x106   :  { %v91_v13 = vadd.f32 %v517_v11, %v90_v7 }
 0x108   :  { %v96_v16 = vmax.f32 %v91_v13, 0.0 }
 0x10d   :  { %v93_v12 = vpop.f32.mrf.mxu1 }
 0x10e   :  { %v94_v14 = vadd.f32 %v517_v11, %v93_v12 }
 0x110   :  { %v97_v15 = vmax.f32 %v94_v14, 0.0 }
 0x112   :  { %115 = vmatpush.msra.mxu2 %v97_v15 }
 0x114   :  { %116 = vmatpush.msra.mxu2 %v96_v16 }
 0x115   :  { %495 = vmatmul.msk.f32.vlgmr.msra.gmra.mxu2 %vm35_vm0, %v626_v17 }
 0x116   :  { %180 = vmatpush.msrb.mxu2 %v97_v15 }
 0x118   :  { %181 = vmatpush.msrb.mxu2 %v96_v16 }
 0x11d   :  { %497 = vmatmul.msk.f32.vlgmr.msrb.gmra.mxu2 %vm35_vm0, %v612_v2 }
 0x125   :  { %498 = vmatmul.msk.f32.gmra.mxu2 %vm35_vm0, %v619_v3 }
 0x198   :  { %v118_v23 = vpop.f32.mrf.mxu2 }
 0x199   :  { %496 = vmatmul.msk.f32.vlgmr.msra.gmra.mxu3 %vm125_vm2, %v118_v23  ;;  %v405_v23 = vld [vmem:[#allocation2 + $0xf0] sm:$0xff] }
 0x19a   :  { %379 = vmatpush.msra.mxu3 %v363_v57 }
 0x19c   :  { %380 = vmatpush.msra.mxu3 %v362_v58 }
 0x19e   :  { %381 = vmatpush.msra.mxu3 %v361_v59 }
 0x1a0   :  { %v183_v24 = vpop.f32.mrf.mxu2  ;;  %382 = vmatpush.msra.mxu3 %v360_v60 }
 0x1a1   :  { %499 = vmatmul.msk.f32.vlgmr.msrb.gmra.mxu3 %vm125_vm2, %v183_v24  ;;  %v521_v24 = vld [vmem:[#allocation2 + $0xe8] ss:$0 sm:$0xff] }
 0x1a2   :  { %454 = vmatpush.msrb.mxu3 %v406_v22 }
 0x1a4   :  { %455 = vmatpush.msrb.mxu3 %v405_v23 }
 0x1a8   :  { %v186_v25 = vpop.f32.mrf.mxu2 }
 0x1a9   :  { %500 = vmatmul.msk.f32.gmra.mxu3 %vm125_vm2, %v186_v25 }
 0x21c   :  { %v637_v26 = vpop.f32.mrf.mxu3 }
 0x21d   :  { %v151_v27 = vrot.slane %v637_v26, 2  ;;  %v156_v29 = vrot.slane %v637_v26, 4 }
 0x21f   :  { %152 = vrot.lane.b32.xlu0 %v151_v27, %s582_s0 }
 0x224   :  { %v213_v28 = vpop.f32.mrf.mxu3 }
 0x225   :  { %v214_v32 = vadd.f32 %v518_v30, %v213_v28  ;;  %v522_v28 = vld [vmem:[#allocation2 + $0x100] ss:$0 sm:$0xff] }
 0x227   :  { %157 = vrot.lane.b32.xlu0 %v156_v29, %s583_s25  ;;  %v219_v35 = vmax.f32 %v214_v32, 0.0 }
 0x22c   :  { %v216_v31 = vpop.f32.mrf.mxu3 }
 0x22d   :  { %v217_v33 = vadd.f32 %v518_v30, %v216_v31 }
 0x22f   :  { %v220_v34 = vmax.f32 %v217_v33, 0.0 }
 0x231   :  { %235 = vmatpush.msrb.mxu1 %v220_v34 }
 0x233   :  { %236 = vmatpush.msrb.mxu1 %v219_v35 }
 0x234   :  { %501 = vmatmul.msk.f32.vlgmr.msrb.gmra.mxu1 %vm35_vm0, %v626_v17 }
 0x235   :  { %299 = vmatpush.msra.mxu1 %v220_v34 }
 0x237   :  { %300 = vmatpush.msra.mxu1 %v219_v35 }
 0x23c   :  { %503 = vmatmul.msk.f32.vlgmr.msra.gmra.mxu1 %vm35_vm0, %v612_v2  ;;  %v402_v2 = vld [vmem:[#allocation2 + $0xd8] sm:$0xff] }
 0x244   :  { %504 = vmatmul.msk.f32.gmra.mxu1 %vm35_vm0, %v619_v3  ;;  %v401_v3 = vld [vmem:[#allocation2 + $0xd0] sm:$0xff] }
 0x291   :  { %v153_v5 = vpop.permute.xlu0 %152 }
 0x292   :  { %v155_v8 = vadd.f32 %v153_v5, %v637_v26 }
 0x299   :  { %v158_v7 = vpop.permute.xlu0 %157 }
 0x29a   :  { %v160_v9 = vadd.f32 %v158_v7, %v155_v8 }
 0x2b1   :  { %v238_v44 = vpop.f32.mrf.mxu1 }
 0x2b2   :  { %502 = vmatmul.msk.f32.vlgmr.msrb.gmra.mxu0 %vm125_vm2, %v238_v44 }
 0x2b9   :  { %v302_v45 = vpop.f32.mrf.mxu1 }
 0x2ba   :  { %505 = vmatmul.msk.f32.vlgmr.msra.gmra.mxu0 %vm125_vm2, %v302_v45 }
 0x2c1   :  { %v305_v46 = vpop.f32.mrf.mxu1 }
 0x2c2   :  { %506 = vmatmul.msk.f32.gmra.mxu0 %vm125_vm2, %v305_v46 }
 0x32f   :  { %v265_v47 = vpop.f32.mrf.mxu0 }
 0x330   :  { %v270_v48 = vrot.slane %v265_v47, 2  ;;  %v275_v50 = vrot.slane %v265_v47, 4  ;;  %v268_v10 = vadd.f32 %v265_v47, %v160_v9 }
 0x332   :  { %271 = vrot.lane.b32.xlu1 %v270_v48, %s582_s0 }
 0x337   :  { %v332_v49 = vpop.f32.mrf.mxu0 }
 0x338   :  { %v333_v53 = vadd.f32 %v519_v51, %v332_v49 }
 0x33a   :  { %276 = vrot.lane.b32.xlu1 %v275_v50, %s583_s25  ;;  %v338_v56 = vmax.f32 %v333_v53, 0.0 }
 0x33f   :  { %v335_v52 = vpop.f32.mrf.mxu0 }
 0x340   :  { %v336_v54 = vadd.f32 %v519_v51, %v335_v52 }
 0x342   :  { %v339_v55 = vmax.f32 %v336_v54, 0.0 }
 0x344   :  { %354 = vmatpush.msra.mxu2 %v339_v55 }
 0x346   :  { %355 = vmatpush.msra.mxu2 %v338_v56 }
 0x347   :  { %507 = vmatmul.msk.f32.vlgmr.msra.gmra.mxu2 %vm35_vm0, %v626_v17  ;;  %v520_v17 = vld [vmem:[#allocation2 + $0xc0] ss:$0 sm:$0xff] }
 0x348   :  { %427 = vmatpush.msrb.mxu2 %v403_v1 }
 0x34a   :  { %428 = vmatpush.msrb.mxu2 %v402_v2 }
 0x34c   :  { %429 = vmatpush.msrb.mxu2 %v401_v3 }
 0x34e   :  { %430 = vmatpush.msrb.mxu2 %v400_v4 }
 0x3a4   :  { %v272_v6 = vpop.permute.xlu1 %271 }
 0x3a5   :  { %v274_v13 = vadd.f32 %v272_v6, %v268_v10 }
 0x3ac   :  { %v277_v11 = vpop.permute.xlu1 %276 }
 0x3ad   :  { %v279_v14 = vadd.f32 %v277_v11, %v274_v13 }
 0x3ca   :  { %v357_v61 = vpop.f32.mrf.mxu2 }
 0x3cb   :  { %508 = vmatmul.msk.f32.vlgmr.msra.gmra.mxu3 %vm125_vm2, %v357_v61 }
 0x44e   :  { %v384_v62 = vpop.f32.mrf.mxu3 }
 0x44f   :  { %v389_v63 = vrot.slane %v384_v62, 2  ;;  %v394_v0 = vrot.slane %v384_v62, 4  ;;  %v387_v15 = vadd.f32 %v384_v62, %v279_v14 }
 0x451   :  { %390 = vrot.lane.b32.xlu2 %v389_v63, %s582_s0 }
 0x459   :  { %395 = vrot.lane.b32.xlu2 %v394_v0, %s583_s25 }
 0x4ab   :  { %v391_v12 = vpop.permute.xlu2 %390 }
 0x4ac   :  { %v393_v16 = vadd.f32 %v391_v12, %v387_v15 }
 0x4b3   :  { %v396_v18 = vpop.permute.xlu2 %395 }
 0x4b4   :  { %v398_v19 = vadd.f32 %v396_v18, %v393_v16 }
 0x4b6   :  { %v409_v20 = vadd.f32 %v520_v17, %v398_v19 }
 0x4b8   :  { %v410_v21 = vmax.f32 %v409_v20, 0.0 }
 0x4ba   :  { %509 = vmatmul.msk.f32.vlgmr.msrb.gmra.mxu2 %vm125_vm2, %v410_v21 }
 0x53d   :  { %v432_v25 = vpop.f32.mrf.mxu2 }
 0x53e   :  { %v433_v26 = vadd.f32 %v521_v24, %v432_v25 }
 0x540   :  { %v435_v27 = vmax.f32 %v433_v26, 0.0 }
 0x542   :  { %510 = vmatmul.msk.f32.vlgmr.msrb.gmra.mxu3 %vm35_vm0, %v435_v27 }
 0x5c5   :  { %v457_v29 = vpop.f32.mrf.mxu3 }
 0x5c6   :  { %v458_v30 = vadd.f32 %v522_v28, %v457_v29 }
 0x5c8   :  { %v461_v31 = vsel %vm460_vm3, %v458_v30, -inf }
 0x5c9   :  { %462 = vmax.xlane.f32.xlu0 %v461_v31 }
 0x63c   :  { %v463_v32 = vpop.xlane.xlu0 %462 }
 0x63d   :  { %v464_v33 = vsub.f32 %v458_v30, %v463_v32 }
 0x63f   :  { %v465_v34 = vmul.f32 1.442695, %v464_v33 }
 0x641   :  { %523 = vpow2.f32 %v465_v34 }
 0x647   :  { %v524_v35 = vpop.eup %523 }
 0x648   :  { %v467_v36 = vsel %vm460_vm3, %v524_v35, 0.0 }
 0x649   :  { %468 = vadd.xlane.f32.xlu1 %v467_v36 }
 0x6bc   :  { %v469_v37 = vpop.xlane.xlu1 %468 }
 0x6bd   :  { %525 = vlog2.f32 %v469_v37 }
 0x6c3   :  { %v526_v38 = vpop.eup %525 }
 0x6c4   :  { %v471_v39 = vmul.f32 0.6931472, %v526_v38 }
 0x6c6   :  { %v472_v40 = vsub.f32 %v464_v33, %v471_v39 }
 0x6c8   :  { %473 = vst.msk [vmem:[#allocation5] sm:$0x3] %vm460_vm3, %v472_v40 }
 0x6c9   :  { %484 = dma.vmem_to_hbm [thread:$0]  %s480_s27, 32, %s482_s30, [#allocation4]  }
 0x6ca   :  { %577 = dma.done.wait [#allocation4], 32  }
 0x6cb   :  { %578 = vsyncadd [#allocation4], 4294967264 }
 0x6cc   :  { %489 = vsyncpa [#allocation3], 1 }
 0x6cd   :  { %490 = vsyncpa [#allocation4], 1 }

</bundles_post_ra>
